<compile_context>
chip_gen: v5e
topology: v5e:2x2
jax: 0.10.0
libtpu: 0.0.40
codegen_flags: <defaults>
</compile_context>

<pallas_src>
import jax
import jax.numpy as jnp
from jax import lax
from jax.experimental import pallas as pl
from jax.experimental.pallas import tpu as pltpu

EPS = 1e-5


# ---------------------------------------------------------------------------
# Fused Pallas kernel (channel-major: activations are (C, HW))
# ---------------------------------------------------------------------------
def _make_bottleneck_kernel(H, W, Bt):
    HW = H * W

    def kernel(x_ref, masks_ref, s0_ref, b0_ref, w1_ref, b2_ref,
               w2_ref, b3_ref, w3_ref, o_ref):
        # Grid-invariant operands, loaded once per grid step (hoisted out of
        # the per-image loop).
        masks = masks_ref[...]          # (9, 1, HW) f32 boundary masks
        s0 = s0_ref[...]                # (Cin, 1) f32
        b0 = b0_ref[...]                # (Cin, 1) f32
        w1 = w1_ref[...]                # (C1, Cin) bf16 (BN2 scale folded)
        b2 = b2_ref[...]                # (C1, 1)  f32
        w2 = w2_ref[...]                # (C2, 9*C1) bf16 (BN3 scale folded)
        b3 = b3_ref[...]                # (C2, 1)  f32
        w3 = w3_ref[...]                # (Cout, C2) bf16

        for b in range(Bt):             # static unroll over the images in the block
            x = x_ref[b]                # (Cin, HW) f32

            # BN1 (+ channel_selection folded into zero columns of w1) + ReLU
            h0 = jnp.maximum(x * s0 + b0, 0.0)

            # conv1 (1x1): (C1, Cin) @ (Cin, HW); BN2 shift + ReLU
            h1 = jnp.maximum(
                jnp.dot(w1, h0.astype(jnp.bfloat16),
                        preferred_element_type=jnp.float32) + b2,
                0.0)                                                   # (C1, HW)

            # conv2 (3x3, stride 1, pad 1): 9 lane-rolled + masked copies of h1
            # concatenated along the contraction axis -> a single MXU matmul.
            taps = []
            t = 0
            for dh in (-1, 0, 1):
                for dw in (-1, 0, 1):
                    delta = dh * W + dw
                    if delta == 0:
                        tap = h1                      # center tap needs no mask
                    else:
                        # tap[:, l] = h1[:, l + delta]; wrapped lanes are zeroed
                        # by the precomputed boundary mask.
                        shifted = pltpu.roll(h1, (-delta) % HW, axis=1)
                        tap = shifted * masks[t]
                    taps.append(tap)
                    t += 1
            tap_cat = jnp.concatenate(taps, axis=0).astype(jnp.bfloat16)  # (9*C1, HW)

            # BN3 shift (scale already folded into w2) + ReLU
            h2 = jnp.maximum(
                jnp.dot(w2, tap_cat, preferred_element_type=jnp.float32) + b3,
                0.0)                                                   # (C2, HW)

            # conv3 (1x1) + identity residual (inplanes == planes * expansion)
            o_ref[b] = jnp.dot(w3, h2.astype(jnp.bfloat16),
                               preferred_element_type=jnp.float32) + x

    return kernel


# ---------------------------------------------------------------------------
# JAX glue
# ---------------------------------------------------------------------------
def _fold_bn(gamma, beta, mean, var):
    scale = gamma / jnp.sqrt(var + EPS)
    shift = beta - mean * scale
    return scale, shift


def _boundary_masks(H, W):
    """(9, 1, HW) float masks: tap t=(dh+1)*3+(dw+1) keeps dest pixels whose
    source (y+dh, x+dw) is inside the image."""
    HW = H * W
    flat = jnp.arange(HW, dtype=jnp.int32)
    yy = flat // W
    xx = flat % W
    masks = []
    for dh in (-1, 0, 1):
        for dw in (-1, 0, 1):
            valid = jnp.ones((HW,), dtype=bool)
            if dh < 0:
                valid = valid & (yy >= -dh)
            if dh > 0:
                valid = valid & (yy < H - dh)
            if dw < 0:
                valid = valid & (xx >= -dw)
            if dw > 0:
                valid = valid & (xx < W - dw)
            masks.append(valid)
    return jnp.stack(masks).astype(jnp.float32).reshape(9, 1, HW)


def bottleneck_forward(x_nchw, params, stride=1, batch_tile=2):
    """Pre-activation Bottleneck forward (downsample=None => identity residual)."""
    # TODO(synk): stride != 1 / conv-downsample residual path is not implemented
    # (the enclosing module passes downsample=None, which requires stride == 1).
    assert stride == 1, "identity residual path requires stride == 1"

    N, Cin, H, W = x_nchw.shape
    HW = H * W
    Bt = batch_tile
    if N % Bt != 0:
        Bt = 1
    # Channel-major: pure reshape of NCHW, no HBM transpose.
    x_flat = x_nchw.astype(jnp.float32).reshape(N, Cin, HW)

    s0, b0 = _fold_bn(*params["bn1"])
    s2, b2 = _fold_bn(*params["bn2"])
    s3, b3 = _fold_bn(*params["bn3"])

    sel_idx = params["sel_idx"]
    C1 = params["w1"].shape[0]
    C2 = params["w2"].shape[0]
    Cout = params["w3"].shape[0]
    assert Cout == Cin, "identity residual requires inplanes == planes * 4"

    # conv1: expand to the full input width (channel_selection becomes zero
    # columns, so the kernel consumes x directly) and fold BN2 scale (in f32),
    # then cast to bf16 for the MXU.
    w1_sel = params["w1"][:, :, 0, 0]                                  # (C1, cfg0)
    w1_full = jnp.zeros((C1, Cin), jnp.float32).at[:, sel_idx].set(w1_sel)
    w1s = (w1_full * s2[:, None]).astype(jnp.bfloat16)                 # (C1, Cin)

    # conv2: 9 taps laid out along the contraction axis, BN3 scale folded (f32)
    # then cast.  w2cat[:, t*C1:(t+1)*C1] == w2[:, :, kh, kw] with t = kh*3+kw.
    w2cat = jnp.transpose(params["w2"], (0, 2, 3, 1)).reshape(C2, 9 * C1)
    w2s = (w2cat * s3[:, None]).astype(jnp.bfloat16)                   # (C2, 9*C1)

    # conv3
    w3 = params["w3"][:, :, 0, 0].astype(jnp.bfloat16)                 # (Cout, C2)

    masks = _boundary_masks(H, W)                                      # (9, 1, HW)

    kernel = _make_bottleneck_kernel(H, W, Bt)

    flops = 2 * N * HW * (Cin * C1 + 9 * C1 * C2 + C2 * Cout)
    bytes_accessed = (4 * N * HW * (Cin + Cout)
                      + 2 * (Cin * C1 + 9 * C1 * C2 + C2 * Cout)
                      + 4 * (9 * HW + 2 * Cin + C1 + C2))

    # NOTE: the weight/mask inputs are grid-invariant and tiny (a few KB), so
    # single-buffering them (pl.Buffered(1)) is not worth the extra spec churn
    # here; at production widths on v7x (64 MiB VMEM) it would be.
    out_flat = pl.pallas_call(
        kernel,
        out_shape=jax.ShapeDtypeStruct((N, Cout, HW), jnp.float32),
        grid=(N // Bt,),
        in_specs=[
            pl.BlockSpec((Bt, Cin, HW), lambda n: (n, 0, 0)),   # x (Bt images)
            pl.BlockSpec((9, 1, HW), lambda n: (0, 0, 0)),      # boundary masks
            pl.BlockSpec((Cin, 1), lambda n: (0, 0)),           # BN1 scale
            pl.BlockSpec((Cin, 1), lambda n: (0, 0)),           # BN1 shift
            pl.BlockSpec((C1, Cin), lambda n: (0, 0)),          # w1 (BN2-scaled, bf16)
            pl.BlockSpec((C1, 1), lambda n: (0, 0)),            # BN2 shift
            pl.BlockSpec((C2, 9 * C1), lambda n: (0, 0)),       # w2 taps (BN3-scaled, bf16)
            pl.BlockSpec((C2, 1), lambda n: (0, 0)),            # BN3 shift
            pl.BlockSpec((Cout, C2), lambda n: (0, 0)),         # w3 (bf16)
        ],
        out_specs=pl.BlockSpec((Bt, Cout, HW), lambda n: (n, 0, 0)),
        compiler_params=pltpu.CompilerParams(
            dimension_semantics=("parallel",),
            vmem_limit_bytes=32 * 1024 * 1024),
        cost_estimate=pl.CostEstimate(flops=flops, transcendentals=0,
                                      bytes_accessed=bytes_accessed),
    )(x_flat, masks, s0[:, None], b0[:, None], w1s, b2[:, None], w2s,
      b3[:, None], w3)

    # Pure reshape back to NCHW — no transpose.
    return out_flat.reshape(N, Cout, H, W)


# ---------------------------------------------------------------------------
# Reference (plain JAX / XLA) for sanity checking
# ---------------------------------------------------------------------------
def reference_forward(x, params, stride=1):
    def bn(x, g, b, m, v):
        g, b, m, v = (t[None, :, None, None] for t in (g, b, m, v))
        return (x - m) / jnp.sqrt(v + EPS) * g + b

    def conv(x, w, stride, pad):
        return lax.conv_general_dilated(
            x, w, (stride, stride), pad,
            dimension_numbers=("NCHW", "OIHW", "NCHW"),
            precision=lax.Precision.HIGHEST)

    residual = x
    out = bn(x, *params["bn1"])
    out = out[:, params["sel_idx"], :, :]
    out = jnp.maximum(out, 0.0)
    out = conv(out, params["w1"], 1, "VALID")
    out = bn(out, *params["bn2"])
    out = jnp.maximum(out, 0.0)
    out = conv(out, params["w2"], stride, ((1, 1), (1, 1)))
    out = bn(out, *params["bn3"])
    out = jnp.maximum(out, 0.0)
    out = conv(out, params["w3"], 1, "VALID")
    return out + residual


# ---------------------------------------------------------------------------
# Main
# ---------------------------------------------------------------------------
if __name__ == "__main__":
    # Module config: inplanes = planes * expansion so the identity residual matches.
    planes = 4
    inplanes = planes * 4          # 16
    cfg = [12, 8, 8]               # channels after selection / conv1 / conv2
    stride = 1                     # downsample=None requires stride 1

    N, H, W = 4, 16, 16            # HW = 256 -> lane-dense (2 x 128) tiles

    key = jax.random.PRNGKey(0)
    keys = jax.random.split(key, 16)

    def bn_params(k, c):
        k1, k2, k3, k4 = jax.random.split(k, 4)
        gamma = 1.0 + 0.1 * jax.random.normal(k1, (c,), jnp.float32)
        beta = 0.1 * jax.random.normal(k2, (c,), jnp.float32)
        mean = 0.1 * jax.random.normal(k3, (c,), jnp.float32)
        var = jnp.abs(jax.random.normal(k4, (c,), jnp.float32)) + 0.5
        return (gamma, beta, mean, var)

    params = {
        "bn1": bn_params(keys[0], inplanes),
        # channel_selection: deterministic mask selecting the first cfg[0] channels
        "sel_idx": jnp.arange(cfg[0], dtype=jnp.int32),
        "w1": 0.1 * jax.random.normal(keys[1], (cfg[1], cfg[0], 1, 1), jnp.float32),
        "bn2": bn_params(keys[2], cfg[1]),
        "w2": 0.1 * jax.random.normal(keys[3], (cfg[2], cfg[1], 3, 3), jnp.float32),
        "bn3": bn_params(keys[4], cfg[2]),
        "w3": 0.1 * jax.random.normal(keys[5], (planes * 4, cfg[2], 1, 1), jnp.float32),
    }

    x = jax.random.normal(keys[6], (N, inplanes, H, W), jnp.float32)

    out = bottleneck_forward(x, params, stride=stride, batch_tile=2)
    out = jax.block_until_ready(out)

    ref = reference_forward(x, params, stride=stride)
    assert out.shape == ref.shape == (N, planes * 4, H, W)
    # bf16 MXU inputs (f32 accumulation) -> slightly looser tolerance than pure f32.
    assert jnp.allclose(out, ref, atol=3e-2, rtol=3e-2), (
        float(jnp.max(jnp.abs(out - ref))))

    print("KERNEL_OK")
</pallas_src>

<mosaic_0001>
module attributes {stable_mosaic.version = 11 : i64} {
  func.func @kernel(%arg0: i32, %arg1: memref<2x16x256xf32, #tpu.memory_space<vmem>>, %arg2: memref<9x1x256xf32, #tpu.memory_space<vmem>>, %arg3: memref<16x1xf32, #tpu.memory_space<vmem>>, %arg4: memref<16x1xf32, #tpu.memory_space<vmem>>, %arg5: memref<8x16xbf16, #tpu.memory_space<vmem>>, %arg6: memref<8x1xf32, #tpu.memory_space<vmem>>, %arg7: memref<8x72xbf16, #tpu.memory_space<vmem>>, %arg8: memref<8x1xf32, #tpu.memory_space<vmem>>, %arg9: memref<16x8xbf16, #tpu.memory_space<vmem>>, %arg10: memref<2x16x256xf32, #tpu.memory_space<vmem>>) attributes {dimension_semantics = [#tpu.dimension_semantics<parallel>], iteration_bounds = array<i64: 2>, scalar_prefetch = 0 : i64, scratch_operands = 0 : i64, tpu.core_type = #tpu.core_type<tc>, window_params = [{transform_indices = @transform_0, window_bounds = array<i64: 2, 16, 256>}, {pipeline_mode = #tpu.pipeline_mode<synchronous>, transform_indices = @transform_1, window_bounds = array<i64: 9, 1, 256>}, {pipeline_mode = #tpu.pipeline_mode<synchronous>, transform_indices = @transform_2, window_bounds = array<i64: 16, 1>}, {pipeline_mode = #tpu.pipeline_mode<synchronous>, transform_indices = @transform_3, window_bounds = array<i64: 16, 1>}, {pipeline_mode = #tpu.pipeline_mode<synchronous>, transform_indices = @transform_4, window_bounds = array<i64: 8, 16>}, {pipeline_mode = #tpu.pipeline_mode<synchronous>, transform_indices = @transform_5, window_bounds = array<i64: 8, 1>}, {pipeline_mode = #tpu.pipeline_mode<synchronous>, transform_indices = @transform_6, window_bounds = array<i64: 8, 72>}, {pipeline_mode = #tpu.pipeline_mode<synchronous>, transform_indices = @transform_7, window_bounds = array<i64: 8, 1>}, {pipeline_mode = #tpu.pipeline_mode<synchronous>, transform_indices = @transform_8, window_bounds = array<i64: 16, 8>}, {transform_indices = @transform_9, window_bounds = array<i64: 2, 16, 256>}]} {
    %c0 = arith.constant 0 : index
    %c0_0 = arith.constant 0 : index
    %c0_1 = arith.constant 0 : index
    %0 = vector.load %arg2[%c0, %c0_0, %c0_1] : memref<9x1x256xf32, #tpu.memory_space<vmem>>, vector<9x1x256xf32>
    %c0_2 = arith.constant 0 : index
    %c0_3 = arith.constant 0 : index
    %1 = vector.load %arg3[%c0_2, %c0_3] : memref<16x1xf32, #tpu.memory_space<vmem>>, vector<16x1xf32>
    %c0_4 = arith.constant 0 : index
    %c0_5 = arith.constant 0 : index
    %2 = vector.load %arg4[%c0_4, %c0_5] : memref<16x1xf32, #tpu.memory_space<vmem>>, vector<16x1xf32>
    %c0_6 = arith.constant 0 : index
    %c0_7 = arith.constant 0 : index
    %3 = vector.load %arg5[%c0_6, %c0_7] : memref<8x16xbf16, #tpu.memory_space<vmem>>, vector<8x16xbf16>
    %c0_8 = arith.constant 0 : index
    %c0_9 = arith.constant 0 : index
    %4 = vector.load %arg6[%c0_8, %c0_9] : memref<8x1xf32, #tpu.memory_space<vmem>>, vector<8x1xf32>
    %c0_10 = arith.constant 0 : index
    %c0_11 = arith.constant 0 : index
    %5 = vector.load %arg7[%c0_10, %c0_11] : memref<8x72xbf16, #tpu.memory_space<vmem>>, vector<8x72xbf16>
    %c0_12 = arith.constant 0 : index
    %c0_13 = arith.constant 0 : index
    %6 = vector.load %arg8[%c0_12, %c0_13] : memref<8x1xf32, #tpu.memory_space<vmem>>, vector<8x1xf32>
    %c0_14 = arith.constant 0 : index
    %c0_15 = arith.constant 0 : index
    %7 = vector.load %arg9[%c0_14, %c0_15] : memref<16x8xbf16, #tpu.memory_space<vmem>>, vector<16x8xbf16>
    %c0_16 = arith.constant 0 : index
    %c0_17 = arith.constant 0 : index
    %c0_18 = arith.constant 0 : index
    %8 = vector.load %arg1[%c0_16, %c0_17, %c0_18] : memref<2x16x256xf32, #tpu.memory_space<vmem>>, vector<1x16x256xf32>
    %9 = vector.shape_cast %8 : vector<1x16x256xf32> to vector<16x256xf32>
    %10 = vector.broadcast %1 : vector<16x1xf32> to vector<16x256xf32>
    %11 = arith.mulf %9, %10 : vector<16x256xf32>
    %12 = vector.broadcast %2 : vector<16x1xf32> to vector<16x256xf32>
    %13 = arith.addf %11, %12 : vector<16x256xf32>
    %cst = arith.constant 0.000000e+00 : f32
    %14 = vector.broadcast %cst : f32 to vector<16x256xf32>
    %15 = arith.maximumf %13, %14 : vector<16x256xf32>
    %16 = arith.truncf %15 : vector<16x256xf32> to vector<16x256xbf16>
    %cst_19 = arith.constant dense<0.000000e+00> : vector<8x256xf32>
    %17 = tpu.matmul %3, %16, %cst_19 {dimension_numbers = #tpu.dot_dimension_numbers<[1], [0], [0], [1], [0, 0, 1, 1], [], []>} : vector<8x16xbf16>, vector<16x256xbf16>, vector<8x256xf32> -> vector<8x256xf32>
    %18 = vector.broadcast %4 : vector<8x1xf32> to vector<8x256xf32>
    %19 = arith.addf %17, %18 : vector<8x256xf32>
    %cst_20 = arith.constant 0.000000e+00 : f32
    %20 = vector.broadcast %cst_20 : f32 to vector<8x256xf32>
    %21 = arith.maximumf %19, %20 : vector<8x256xf32>
    %c17_i32 = arith.constant 17 : i32
    %22 = tpu.dynamic_rotate %21 by %c17_i32 dim 1 : vector<8x256xf32>, i32 -> vector<8x256xf32>
    %23 = vector.extract_strided_slice %0 {offsets = [0, 0, 0], sizes = [1, 1, 256], strides = [1, 1, 1]} : vector<9x1x256xf32> to vector<1x1x256xf32>
    %24 = vector.shape_cast %23 : vector<1x1x256xf32> to vector<1x256xf32>
    %25 = vector.broadcast %24 : vector<1x256xf32> to vector<8x256xf32>
    %26 = arith.mulf %22, %25 : vector<8x256xf32>
    %c16_i32 = arith.constant 16 : i32
    %27 = tpu.dynamic_rotate %21 by %c16_i32 dim 1 : vector<8x256xf32>, i32 -> vector<8x256xf32>
    %28 = vector.extract_strided_slice %0 {offsets = [1, 0, 0], sizes = [1, 1, 256], strides = [1, 1, 1]} : vector<9x1x256xf32> to vector<1x1x256xf32>
    %29 = vector.shape_cast %28 : vector<1x1x256xf32> to vector<1x256xf32>
    %30 = vector.broadcast %29 : vector<1x256xf32> to vector<8x256xf32>
    %31 = arith.mulf %27, %30 : vector<8x256xf32>
    %c15_i32 = arith.constant 15 : i32
    %32 = tpu.dynamic_rotate %21 by %c15_i32 dim 1 : vector<8x256xf32>, i32 -> vector<8x256xf32>
    %33 = vector.extract_strided_slice %0 {offsets = [2, 0, 0], sizes = [1, 1, 256], strides = [1, 1, 1]} : vector<9x1x256xf32> to vector<1x1x256xf32>
    %34 = vector.shape_cast %33 : vector<1x1x256xf32> to vector<1x256xf32>
    %35 = vector.broadcast %34 : vector<1x256xf32> to vector<8x256xf32>
    %36 = arith.mulf %32, %35 : vector<8x256xf32>
    %c1_i32 = arith.constant 1 : i32
    %37 = tpu.dynamic_rotate %21 by %c1_i32 dim 1 : vector<8x256xf32>, i32 -> vector<8x256xf32>
    %38 = vector.extract_strided_slice %0 {offsets = [3, 0, 0], sizes = [1, 1, 256], strides = [1, 1, 1]} : vector<9x1x256xf32> to vector<1x1x256xf32>
    %39 = vector.shape_cast %38 : vector<1x1x256xf32> to vector<1x256xf32>
    %40 = vector.broadcast %39 : vector<1x256xf32> to vector<8x256xf32>
    %41 = arith.mulf %37, %40 : vector<8x256xf32>
    %c255_i32 = arith.constant 255 : i32
    %42 = tpu.dynamic_rotate %21 by %c255_i32 dim 1 : vector<8x256xf32>, i32 -> vector<8x256xf32>
    %43 = vector.extract_strided_slice %0 {offsets = [5, 0, 0], sizes = [1, 1, 256], strides = [1, 1, 1]} : vector<9x1x256xf32> to vector<1x1x256xf32>
    %44 = vector.shape_cast %43 : vector<1x1x256xf32> to vector<1x256xf32>
    %45 = vector.broadcast %44 : vector<1x256xf32> to vector<8x256xf32>
    %46 = arith.mulf %42, %45 : vector<8x256xf32>
    %c241_i32 = arith.constant 241 : i32
    %47 = tpu.dynamic_rotate %21 by %c241_i32 dim 1 : vector<8x256xf32>, i32 -> vector<8x256xf32>
    %48 = vector.extract_strided_slice %0 {offsets = [6, 0, 0], sizes = [1, 1, 256], strides = [1, 1, 1]} : vector<9x1x256xf32> to vector<1x1x256xf32>
    %49 = vector.shape_cast %48 : vector<1x1x256xf32> to vector<1x256xf32>
    %50 = vector.broadcast %49 : vector<1x256xf32> to vector<8x256xf32>
    %51 = arith.mulf %47, %50 : vector<8x256xf32>
    %c240_i32 = arith.constant 240 : i32
    %52 = tpu.dynamic_rotate %21 by %c240_i32 dim 1 : vector<8x256xf32>, i32 -> vector<8x256xf32>
    %53 = vector.extract_strided_slice %0 {offsets = [7, 0, 0], sizes = [1, 1, 256], strides = [1, 1, 1]} : vector<9x1x256xf32> to vector<1x1x256xf32>
    %54 = vector.shape_cast %53 : vector<1x1x256xf32> to vector<1x256xf32>
    %55 = vector.broadcast %54 : vector<1x256xf32> to vector<8x256xf32>
    %56 = arith.mulf %52, %55 : vector<8x256xf32>
    %c239_i32 = arith.constant 239 : i32
    %57 = tpu.dynamic_rotate %21 by %c239_i32 dim 1 : vector<8x256xf32>, i32 -> vector<8x256xf32>
    %58 = vector.extract_strided_slice %0 {offsets = [8, 0, 0], sizes = [1, 1, 256], strides = [1, 1, 1]} : vector<9x1x256xf32> to vector<1x1x256xf32>
    %59 = vector.shape_cast %58 : vector<1x1x256xf32> to vector<1x256xf32>
    %60 = vector.broadcast %59 : vector<1x256xf32> to vector<8x256xf32>
    %61 = arith.mulf %57, %60 : vector<8x256xf32>
    %62 = tpu.concatenate %26, %31, %36, %41, %21, %46, %51, %56, %61 in 0 : vector<8x256xf32>, vector<8x256xf32>, vector<8x256xf32>, vector<8x256xf32>, vector<8x256xf32>, vector<8x256xf32>, vector<8x256xf32>, vector<8x256xf32>, vector<8x256xf32> -> vector<72x256xf32>
    %63 = arith.truncf %62 : vector<72x256xf32> to vector<72x256xbf16>
    %cst_21 = arith.constant dense<0.000000e+00> : vector<8x256xf32>
    %64 = tpu.matmul %5, %63, %cst_21 {dimension_numbers = #tpu.dot_dimension_numbers<[1], [0], [0], [1], [0, 0, 1, 1], [], []>} : vector<8x72xbf16>, vector<72x256xbf16>, vector<8x256xf32> -> vector<8x256xf32>
    %65 = vector.broadcast %6 : vector<8x1xf32> to vector<8x256xf32>
    %66 = arith.addf %64, %65 : vector<8x256xf32>
    %cst_22 = arith.constant 0.000000e+00 : f32
    %67 = vector.broadcast %cst_22 : f32 to vector<8x256xf32>
    %68 = arith.maximumf %66, %67 : vector<8x256xf32>
    %69 = arith.truncf %68 : vector<8x256xf32> to vector<8x256xbf16>
    %cst_23 = arith.constant dense<0.000000e+00> : vector<16x256xf32>
    %70 = tpu.matmul %7, %69, %cst_23 {dimension_numbers = #tpu.dot_dimension_numbers<[1], [0], [0], [1], [0, 0, 1, 1], [], []>} : vector<16x8xbf16>, vector<8x256xbf16>, vector<16x256xf32> -> vector<16x256xf32>
    %71 = arith.addf %70, %9 : vector<16x256xf32>
    %c0_24 = arith.constant 0 : index
    %c0_25 = arith.constant 0 : index
    %c0_26 = arith.constant 0 : index
    %72 = vector.load %arg10[%c0_24, %c0_25, %c0_26] : memref<2x16x256xf32, #tpu.memory_space<vmem>>, vector<1x16x256xf32>
    %73 = vector.shape_cast %72 : vector<1x16x256xf32> to vector<16x256xf32>
    %74 = vector.shape_cast %71 : vector<16x256xf32> to vector<1x16x256xf32>
    tpu.vector_store %arg10[%c0_24, %c0_25, %c0_26], %74 {strides = array<i32>} : memref<2x16x256xf32, #tpu.memory_space<vmem>>, vector<1x16x256xf32>,
    %c1 = arith.constant 1 : index
    %c0_27 = arith.constant 0 : index
    %c0_28 = arith.constant 0 : index
    %75 = vector.load %arg1[%c1, %c0_27, %c0_28] : memref<2x16x256xf32, #tpu.memory_space<vmem>>, vector<1x16x256xf32>
    %76 = vector.shape_cast %75 : vector<1x16x256xf32> to vector<16x256xf32>
    %77 = vector.broadcast %1 : vector<16x1xf32> to vector<16x256xf32>
    %78 = arith.mulf %76, %77 : vector<16x256xf32>
    %79 = vector.broadcast %2 : vector<16x1xf32> to vector<16x256xf32>
    %80 = arith.addf %78, %79 : vector<16x256xf32>
    %cst_29 = arith.constant 0.000000e+00 : f32
    %81 = vector.broadcast %cst_29 : f32 to vector<16x256xf32>
    %82 = arith.maximumf %80, %81 : vector<16x256xf32>
    %83 = arith.truncf %82 : vector<16x256xf32> to vector<16x256xbf16>
    %cst_30 = arith.constant dense<0.000000e+00> : vector<8x256xf32>
    %84 = tpu.matmul %3, %83, %cst_30 {dimension_numbers = #tpu.dot_dimension_numbers<[1], [0], [0], [1], [0, 0, 1, 1], [], []>} : vector<8x16xbf16>, vector<16x256xbf16>, vector<8x256xf32> -> vector<8x256xf32>
    %85 = vector.broadcast %4 : vector<8x1xf32> to vector<8x256xf32>
    %86 = arith.addf %84, %85 : vector<8x256xf32>
    %cst_31 = arith.constant 0.000000e+00 : f32
    %87 = vector.broadcast %cst_31 : f32 to vector<8x256xf32>
    %88 = arith.maximumf %86, %87 : vector<8x256xf32>
    %c17_i32_32 = arith.constant 17 : i32
    %89 = tpu.dynamic_rotate %88 by %c17_i32_32 dim 1 : vector<8x256xf32>, i32 -> vector<8x256xf32>
    %90 = vector.extract_strided_slice %0 {offsets = [0, 0, 0], sizes = [1, 1, 256], strides = [1, 1, 1]} : vector<9x1x256xf32> to vector<1x1x256xf32>
    %91 = vector.shape_cast %90 : vector<1x1x256xf32> to vector<1x256xf32>
    %92 = vector.broadcast %91 : vector<1x256xf32> to vector<8x256xf32>
    %93 = arith.mulf %89, %92 : vector<8x256xf32>
    %c16_i32_33 = arith.constant 16 : i32
    %94 = tpu.dynamic_rotate %88 by %c16_i32_33 dim 1 : vector<8x256xf32>, i32 -> vector<8x256xf32>
    %95 = vector.extract_strided_slice %0 {offsets = [1, 0, 0], sizes = [1, 1, 256], strides = [1, 1, 1]} : vector<9x1x256xf32> to vector<1x1x256xf32>
    %96 = vector.shape_cast %95 : vector<1x1x256xf32> to vector<1x256xf32>
    %97 = vector.broadcast %96 : vector<1x256xf32> to vector<8x256xf32>
    %98 = arith.mulf %94, %97 : vector<8x256xf32>
    %c15_i32_34 = arith.constant 15 : i32
    %99 = tpu.dynamic_rotate %88 by %c15_i32_34 dim 1 : vector<8x256xf32>, i32 -> vector<8x256xf32>
    %100 = vector.extract_strided_slice %0 {offsets = [2, 0, 0], sizes = [1, 1, 256], strides = [1, 1, 1]} : vector<9x1x256xf32> to vector<1x1x256xf32>
    %101 = vector.shape_cast %100 : vector<1x1x256xf32> to vector<1x256xf32>
    %102 = vector.broadcast %101 : vector<1x256xf32> to vector<8x256xf32>
    %103 = arith.mulf %99, %102 : vector<8x256xf32>
    %c1_i32_35 = arith.constant 1 : i32
    %104 = tpu.dynamic_rotate %88 by %c1_i32_35 dim 1 : vector<8x256xf32>, i32 -> vector<8x256xf32>
    %105 = vector.extract_strided_slice %0 {offsets = [3, 0, 0], sizes = [1, 1, 256], strides = [1, 1, 1]} : vector<9x1x256xf32> to vector<1x1x256xf32>
    %106 = vector.shape_cast %105 : vector<1x1x256xf32> to vector<1x256xf32>
    %107 = vector.broadcast %106 : vector<1x256xf32> to vector<8x256xf32>
    %108 = arith.mulf %104, %107 : vector<8x256xf32>
    %c255_i32_36 = arith.constant 255 : i32
    %109 = tpu.dynamic_rotate %88 by %c255_i32_36 dim 1 : vector<8x256xf32>, i32 -> vector<8x256xf32>
    %110 = vector.extract_strided_slice %0 {offsets = [5, 0, 0], sizes = [1, 1, 256], strides = [1, 1, 1]} : vector<9x1x256xf32> to vector<1x1x256xf32>
    %111 = vector.shape_cast %110 : vector<1x1x256xf32> to vector<1x256xf32>
    %112 = vector.broadcast %111 : vector<1x256xf32> to vector<8x256xf32>
    %113 = arith.mulf %109, %112 : vector<8x256xf32>
    %c241_i32_37 = arith.constant 241 : i32
    %114 = tpu.dynamic_rotate %88 by %c241_i32_37 dim 1 : vector<8x256xf32>, i32 -> vector<8x256xf32>
    %115 = vector.extract_strided_slice %0 {offsets = [6, 0, 0], sizes = [1, 1, 256], strides = [1, 1, 1]} : vector<9x1x256xf32> to vector<1x1x256xf32>
    %116 = vector.shape_cast %115 : vector<1x1x256xf32> to vector<1x256xf32>
    %117 = vector.broadcast %116 : vector<1x256xf32> to vector<8x256xf32>
    %118 = arith.mulf %114, %117 : vector<8x256xf32>
    %c240_i32_38 = arith.constant 240 : i32
    %119 = tpu.dynamic_rotate %88 by %c240_i32_38 dim 1 : vector<8x256xf32>, i32 -> vector<8x256xf32>
    %120 = vector.extract_strided_slice %0 {offsets = [7, 0, 0], sizes = [1, 1, 256], strides = [1, 1, 1]} : vector<9x1x256xf32> to vector<1x1x256xf32>
    %121 = vector.shape_cast %120 : vector<1x1x256xf32> to vector<1x256xf32>
    %122 = vector.broadcast %121 : vector<1x256xf32> to vector<8x256xf32>
    %123 = arith.mulf %119, %122 : vector<8x256xf32>
    %c239_i32_39 = arith.constant 239 : i32
    %124 = tpu.dynamic_rotate %88 by %c239_i32_39 dim 1 : vector<8x256xf32>, i32 -> vector<8x256xf32>
    %125 = vector.extract_strided_slice %0 {offsets = [8, 0, 0], sizes = [1, 1, 256], strides = [1, 1, 1]} : vector<9x1x256xf32> to vector<1x1x256xf32>
    %126 = vector.shape_cast %125 : vector<1x1x256xf32> to vector<1x256xf32>
    %127 = vector.broadcast %126 : vector<1x256xf32> to vector<8x256xf32>
    %128 = arith.mulf %124, %127 : vector<8x256xf32>
    %129 = tpu.concatenate %93, %98, %103, %108, %88, %113, %118, %123, %128 in 0 : vector<8x256xf32>, vector<8x256xf32>, vector<8x256xf32>, vector<8x256xf32>, vector<8x256xf32>, vector<8x256xf32>, vector<8x256xf32>, vector<8x256xf32>, vector<8x256xf32> -> vector<72x256xf32>
    %130 = arith.truncf %129 : vector<72x256xf32> to vector<72x256xbf16>
    %cst_40 = arith.constant dense<0.000000e+00> : vector<8x256xf32>
    %131 = tpu.matmul %5, %130, %cst_40 {dimension_numbers = #tpu.dot_dimension_numbers<[1], [0], [0], [1], [0, 0, 1, 1], [], []>} : vector<8x72xbf16>, vector<72x256xbf16>, vector<8x256xf32> -> vector<8x256xf32>
    %132 = vector.broadcast %6 : vector<8x1xf32> to vector<8x256xf32>
    %133 = arith.addf %131, %132 : vector<8x256xf32>
    %cst_41 = arith.constant 0.000000e+00 : f32
    %134 = vector.broadcast %cst_41 : f32 to vector<8x256xf32>
    %135 = arith.maximumf %133, %134 : vector<8x256xf32>
    %136 = arith.truncf %135 : vector<8x256xf32> to vector<8x256xbf16>
    %cst_42 = arith.constant dense<0.000000e+00> : vector<16x256xf32>
    %137 = tpu.matmul %7, %136, %cst_42 {dimension_numbers = #tpu.dot_dimension_numbers<[1], [0], [0], [1], [0, 0, 1, 1], [], []>} : vector<16x8xbf16>, vector<8x256xbf16>, vector<16x256xf32> -> vector<16x256xf32>
    %138 = arith.addf %137, %76 : vector<16x256xf32>
    %c1_43 = arith.constant 1 : index
    %c0_44 = arith.constant 0 : index
    %c0_45 = arith.constant 0 : index
    %139 = vector.load %arg10[%c1_43, %c0_44, %c0_45] : memref<2x16x256xf32, #tpu.memory_space<vmem>>, vector<1x16x256xf32>
    %140 = vector.shape_cast %139 : vector<1x16x256xf32> to vector<16x256xf32>
    %141 = vector.shape_cast %138 : vector<16x256xf32> to vector<1x16x256xf32>
    tpu.vector_store %arg10[%c1_43, %c0_44, %c0_45], %141 {strides = array<i32>} : memref<2x16x256xf32, #tpu.memory_space<vmem>>, vector<1x16x256xf32>,
    return
  }
  func.func @transform_0(%arg0: i32) -> (i32, i32, i32) {
    %c0_i32 = arith.constant 0 : i32
    %c0_i32_0 = arith.constant 0 : i32
    %c0_i32_1 = arith.constant 0 : i32
    return %arg0, %c0_i32, %c0_i32_0 : i32, i32, i32
  }
  func.func @transform_1(%arg0: i32) -> (i32, i32, i32) {
    %c0_i32 = arith.constant 0 : i32
    %c0_i32_0 = arith.constant 0 : i32
    %c0_i32_1 = arith.constant 0 : i32
    %c0_i32_2 = arith.constant 0 : i32
    return %c0_i32, %c0_i32_0, %c0_i32_1 : i32, i32, i32
  }
  func.func @transform_2(%arg0: i32) -> (i32, i32) {
    %c0_i32 = arith.constant 0 : i32
    %c0_i32_0 = arith.constant 0 : i32
    %c0_i32_1 = arith.constant 0 : i32
    return %c0_i32, %c0_i32_0 : i32, i32
  }
  func.func @transform_3(%arg0: i32) -> (i32, i32) {
    %c0_i32 = arith.constant 0 : i32
    %c0_i32_0 = arith.constant 0 : i32
    %c0_i32_1 = arith.constant 0 : i32
    return %c0_i32, %c0_i32_0 : i32, i32
  }
  func.func @transform_4(%arg0: i32) -> (i32, i32) {
    %c0_i32 = arith.constant 0 : i32
    %c0_i32_0 = arith.constant 0 : i32
    %c0_i32_1 = arith.constant 0 : i32
    return %c0_i32, %c0_i32_0 : i32, i32
  }
  func.func @transform_5(%arg0: i32) -> (i32, i32) {
    %c0_i32 = arith.constant 0 : i32
    %c0_i32_0 = arith.constant 0 : i32
    %c0_i32_1 = arith.constant 0 : i32
    return %c0_i32, %c0_i32_0 : i32, i32
  }
  func.func @transform_6(%arg0: i32) -> (i32, i32) {
    %c0_i32 = arith.constant 0 : i32
    %c0_i32_0 = arith.constant 0 : i32
    %c0_i32_1 = arith.constant 0 : i32
    return %c0_i32, %c0_i32_0 : i32, i32
  }
  func.func @transform_7(%arg0: i32) -> (i32, i32) {
    %c0_i32 = arith.constant 0 : i32
    %c0_i32_0 = arith.constant 0 : i32
    %c0_i32_1 = arith.constant 0 : i32
    return %c0_i32, %c0_i32_0 : i32, i32
  }
  func.func @transform_8(%arg0: i32) -> (i32, i32) {
    %c0_i32 = arith.constant 0 : i32
    %c0_i32_0 = arith.constant 0 : i32
    %c0_i32_1 = arith.constant 0 : i32
    return %c0_i32, %c0_i32_0 : i32, i32
  }
  func.func @transform_9(%arg0: i32) -> (i32, i32, i32) {
    %c0_i32 = arith.constant 0 : i32
    %c0_i32_0 = arith.constant 0 : i32
    %c0_i32_1 = arith.constant 0 : i32
    return %arg0, %c0_i32, %c0_i32_0 : i32, i32, i32
  }
}

</mosaic_0001>

<bundles_post_ra>
// kernel: tpu_custom_call.1
= control target key start
LH: loop header
LB: loop body
LE: loop exit
PB: predicated region body
PF: predicated region fallthrough
CT: control target
= control target key end

     0   :  { %14 = vsyncpa [#allocation3], 0  ;;  %s1751_s0 = inlined_call_operand.hbm [shape: f32[4,16,256], index: 0, kind: input, shape index: {}]   ;;  %s1752_s1 = inlined_call_operand.vmem [shape: f32[9,1,256], index: 1, kind: input, shape index: {}]   ;;  %s1753_s2 = inlined_call_operand.vmem [shape: f32[16,1], index: 2, kind: input, shape index: {}]   ;;  %s1754_s3 = inlined_call_operand.vmem [shape: f32[16,1], index: 3, kind: input, shape index: {}]   ;;  %s1755_s4 = inlined_call_operand.vmem [shape: bf16[8,16], index: 4, kind: input, shape index: {}]   ;;  %s1756_s5 = inlined_call_operand.vmem [shape: f32[8,1], index: 5, kind: input, shape index: {}]   ;;  %s1757_s6 = inlined_call_operand.vmem [shape: bf16[8,72], index: 6, kind: input, shape index: {}]   ;;  %s1758_s7 = inlined_call_operand.vmem [shape: f32[8,1], index: 7, kind: input, shape index: {}]   ;;  %s1759_s8 = inlined_call_operand.vmem [shape: bf16[16,8], index: 8, kind: input, shape index: {}]   ;;  %s1760_s9 = inlined_call_operand.hbm [shape: f32[4,16,256], index: 9, kind: output, shape index: {}]  }
   0x1   :  { %16 = vsyncpa [#allocation3 + $0x1], 0 }
   0x2   :  { %17 = vsyncpa [#allocation4], 0 }
   0x3   :  { %19 = vsyncpa [#allocation4 + $0x1], 0  ;;  %s1219_s30 = smov 0   ;;  %s1221_s10 = smov 0  }
   0x4   :  { %s1223_s11 = smov 0   ;;  %s1225_s12 = smov 0  }
   0x5 LB: > { %1768 = sst [smem:[#allocation8_spill]] %s1151_s11  ;;  %s1240_s13 = sadd.s32 4294967295, %s1155_s12   ;;  %s1155_s12 = sphi %s1225_s12, %s1779_s12   ;;  %s1151_s11 = sphi %s1223_s11, %s1781_s11   ;;  %s1147_s10 = sphi %s1221_s10, %s1783_s10   ;;  %s1143_s30 = sphi %s1219_s30, %s1782_s30  }
   0x6   : > { %s953_s14 = sadd.s32 4294967294, %s1155_s12   ;;  %s1244_s15 = sadd.s32 1, %s1155_s12  }
   0x7   : > { %1769 = sst [smem:[#allocation9_spill]] %s1244_s15  ;;  %s32_s16 = sadd.s32 1, %s1151_s11 }
   0x8   : > { %s29_s17 = ssub.s32 %s1155_s12, %s1244_s15  ;;  %p39_p0 = scmp.ne.s32.totalorder %s1151_s11, %s1147_s10 }
   0x9   : > { %p30_p1 = scmp.eq.s32.totalorder %s29_s17, 0  ;;  %p40_p2 = scmp.eq.s32.totalorder %s1155_s12, 0 }
   0xa   : > { %p45_p3 = scmp.ne.s32.totalorder %s1147_s10, %s1143_s30  ;;  %p46_p4 = scmp.eq.s32.totalorder %s1240_s13, 0 }
   0xb   : > { %s1256_s18 = scalar_select %p30_p1, %s1151_s11, %s32_s16  }
   0xc   : > { %p1258_p5 = por %p40_p2, %p39_p0  ;;  %p1262_p6 = por %p46_p4, %p45_p3 }
   0xd   : > { %1770 = sst [smem:[#allocation10_spill]] %s1256_s18  ;;  %p237_p7 = scmp.eq.s32.totalorder %s1240_s13, 1 }
   0xe   : > { %p243_p8 = scmp.eq.s32.totalorder %s953_s14, 1  ;;  %p1010_p10 = scmp.lt.s32.totalorder %s1155_s12, 2 }
   0xf   : > { %p1269_p11 = por %p237_p7, %p39_p0  ;;  %s287_s23 = sand.u32 1, %s1151_s11  }
  0x10   : > { %p1273_p12 = por %p243_p8, %p45_p3  ;;  %s994_s24 = sshll.u32 %s1155_s12, 6 }
  0x11   : > { %s956_s25 = sshll.u32 %s287_s23, 6  ;;  %s297_s28 = scalar_lea.hbm %s1751_s0, %s994_s24 }
  0x12   : > { %s298_s29 = sshll.u32 %s297_s28, 4  ;;  %s291_s14 = scalar_lea.vmem [#allocation2], %s956_s25  ;;  %s299_s29 = int_to_ptr.hbm [resolvable:$true] %s298_s29 }
  0x13   : > { %s300_s16 = sshll.u32 %s291_s14, 4  ;;  %p1284_p13 = pnand %p1010_p10, %p1258_p5  ;;  %s301_s16 = int_to_ptr.vmem [resolvable:$true] %s300_s16 }
  0x14   : > { %p960_p0 = scmp.ge.s32.totalorder %s1155_s12, 1  ;;  %p308_p1 = scmp.lt.s32.totalorder %s1155_s12, 3 }
  0x15   : > { %s288_s18 = scalar_lea.sflag [#allocation3], %s287_s23  ;;  %s1059_s11 = sshra.s32 %s299_s29, 4  ;;  %s1060_s11 = int_to_ptr.hbm [resolvable:$true] %s1059_s11 }
  0x16   : > { %s1061_s15 = scalar_lea.hbm %s1060_s11, 64  ;;  %p1063_p3 = pneg %p1284_p13 }
  0x17   : > { %p1062_p2 = scmp.ne.s32.totalorder %s1060_s11, %s1061_s15  ;;  %s1066_s19 = scalar_lea.hbm %s1751_s0, 128 }
  0x18   : > { %p1067_p5 = scmp.lt.s32.totalorder %s1060_s11, %s1751_s0  ;;  %p1068_p8 = scmp.lt.s32.totalorder %s1066_s19, %s1061_s15 }
  0x19   : > { %p1064_p4 = pnand %p1063_p3, %p1062_p2 }
  0x1a   : > { %p1069_p10 = por %p1068_p8, %p1067_p5 }
  0x1b   : > { %p1065_p7 = pneg %p1064_p4 }
  0x1d   : > { %p1070_p9 = pnand %p1069_p10, %p1065_p7 }
  0x1f   : > { %1073 = shalt.err (!%p1070_p9)
}
  0x20   : > { %s1157_s23 = smov 256   ;;  %s1158_s28 = smov 16  }
  0x21   : > { %1005 = dma.hbm_to_vmem [thread:$0]  (!%p1284_p13), %s299_s29, 1024, %s301_s16, %s288_s18, %s1157_s23, %s1157_s23, %s1158_s28  }
  0x22   : > { %p309_p2 = pnand %p960_p0, %p308_p1 }
  0x23   : > { %s1305_s14 = sand.u32 (!%p309_p2), 1, %s1147_s10  }
  0x24   : > { %312 = sbr.rel (%p309_p2) target bundleno = 1200 (0x4b0), region = 56  ;;  %s961_s11 = sshll.u32 (!%p309_p2), %s1305_s14, 6 }
  0x25   : > { %s315_s15 = scalar_lea.sflag (!%p309_p2), [#allocation3], %s1305_s14  ;;  %s1311_s24 = scalar_lea.vmem (!%p309_p2), [#allocation2], %s961_s11 }
  0x29   : > { %1134 = dma.done.wait (%p1262_p6), %s315_s15, 1024  }
  0x2a   : > { %1136 = vsyncadd (%p1262_p6), %s315_s15, 4294966272  ;;  %v1159_v0 = vmov 0   ;;  %v367_v1 = vld [vmem:[%s1754_s3] sm:$0xff]  ;;  %v368_v3 = vld [vmem:[%s1754_s3 + $0x8] sm:$0xff]  ;;  %vm418_vm0 = vcmask 130048   ;;  %s1160_s18 = smov 112   ;;  %v454_v47 = vlaneseq }
  0x2b   : > { %1057 = vset.pattern.permute.xlu1 %v1159_v0  ;;  %1056 = vset.pattern.permute.xlu0 %v1159_v0  ;;  %v365_v2 = vld [vmem:[%s1753_s2] sm:$0xff]  ;;  %v366_v4 = vld [vmem:[%s1753_s2 + $0x8] sm:$0xff]  ;;  %v1353_v18 = vld [vmem:[%s1311_s24 + $0x10] sm:$0xff]  ;;  %s1161_s29 = smov 113   ;;  %s1162_s16 = smov 111   ;;  %vm583_vm2 = vcmask 1043456  }
  0x2c   : > { %1058 = vset.pattern.permute.xlu2 %v1159_v0  ;;  %395 = vperm.xlu1 %1057, %v367_v1   ;;  %v370_v5 = vld [vmem:[%s1756_s5] sm:$0xff]  ;;  %v1336_v7 = vld [vmem:[%s1311_s24 + $0x28] sm:$0xff]  ;;  %v1356_v19 = vld [vmem:[%s1311_s24 + $0x18] sm:$0xff]  ;;  %s1163_s17 = smov 1   ;;  %s1164_s20 = smov 15   ;;  %v1422_v48 = vand.u32 127, %v454_v47 }
  0x2d   : > { %381 = vperm.xlu0 %1056, %v365_v2   ;;  %415 = vperm.xlu2 %1058, %v370_v5   ;;  %v1333_v6 = vld [vmem:[%s1311_s24 + $0x20] sm:$0xff]  ;;  %v1344_v13 = vld [vmem:[%s1311_s24 + $0x8] sm:$0xff]  ;;  %s1165_s25 = smov 127   ;;  %s1764_s19 = smov 16   ;;  %v1427_v49 = vld [vmem:[%s1752_s1 + $0x10] sm:$0x3] }
  0x2e   : > { %v1341_v12 = vld [vmem:[%s1311_s24] sm:$0xff]  ;;  %s1766_s26 = smov 17   ;;  %vm554_vm1 = vcmp.lt.s32.totalorder %v1422_v48, 111  ;;  %v558_v50 = vperm.slane %v1427_v49, 0  ;;  %v559_v51 = vperm.slane %v1427_v49, 1  ;;  %vm512_vm3 = vcmp.lt.s32.totalorder %v1422_v48, 127 }
  0x2f   : > { %v1371_v34 = vld [vmem:[%s1755_s4] sm:$0xf]  ;;  %v1445_v1 = vld [vmem:[%s1752_s1 + $0xc] sm:$0x3]  ;;  %vm526_vm4 = vcmp.lt.s32.totalorder %v1422_v48, 113  ;;  %vm540_vm5 = vcmp.lt.s32.totalorder %v1422_v48, 112 }
  0x30   : > { %v372_v44 = vld [vmem:[%s1758_s7] sm:$0xff]  ;;  %v530_v5 = vperm.slane %v1445_v1, 0  ;;  %vm484_vm6 = vcmp.lt.s32.totalorder %v1422_v48, 15  ;;  %vm498_vm7 = vcmp.lt.s32.totalorder %v1422_v48, 1  ;;  %vm470_vm8 = vcmp.lt.s32.totalorder %v1422_v48, 16  ;;  %s1604_s15 = scalar_lea.vmem [#allocation5], %s961_s11 }
  0x31   : > { %vm456_vm9 = vcmp.lt.s32.totalorder %v1422_v48, 17  ;;  %vm579_vm10 = vcmask 588800   ;;  %vm625_vm11 = vcmask 64512   ;;  %s1776_s11 = smov 17   ;;  %s1109_s28 = scalar_lea.hbm %s1760_s9, 128 }
  0x34   : > { %400 = vperm.xlu1 %1057, %v368_v3   ;;  %v1450_v3 = vld [vmem:[%s1752_s1 + $0xe] sm:$0x3] }
  0x35   : > { %386 = vperm.xlu0 %1056, %v366_v4   ;;  %v1455_v4 = vld [vmem:[%s1752_s1 + $0xa] sm:$0x3] }
  0x87   : > { %v1377_v35 = vpop.permute.xlu2 %415 }
  0x9e   : > { %v396_v8 = vpop.permute.xlu1 %395 }
  0x9f   : > { %v382_v9 = vpop.permute.xlu0 %381 }
  0xa0   : > { %v672_v10 = vmul.f32 %v1333_v6, %v382_v9  ;;  %v673_v11 = vmul.f32 %v1336_v7, %v382_v9  ;;  %v389_v16 = vmul.f32 %v382_v9, %v1341_v12  ;;  %v390_v17 = vmul.f32 %v382_v9, %v1344_v13 }
  0xa1   : > { %v544_v9 = vperm.slane %v1450_v3, 0 }
  0xa2   : > { %v1346_v14 = vadd.f32 %v673_v11, %v396_v8  ;;  %v1348_v15 = vadd.f32 %v672_v10, %v396_v8  ;;  %v403_v22 = vadd.f32 %v396_v8, %v389_v16  ;;  %v404_v24 = vadd.f32 %v396_v8, %v390_v17 }
  0xa3   : > { %v531_v8 = vperm.slane %v1445_v1, 1  ;;  %v545_v10 = vperm.slane %v1450_v3, 1  ;;  %v516_v11 = vperm.slane %v1455_v4, 0  ;;  %v517_v16 = vperm.slane %v1455_v4, 1 }
  0xa4   : > { %v407_v28 = vmax.f32 %v403_v22, 0.0  ;;  %v408_v30 = vmax.f32 %v404_v24, 0.0 }
  0xa6   : > { %v1364_v25 = vpop.permute.xlu1 %400 }
  0xa7   : > { %v1358_v20 = vpop.permute.xlu0 %386 }
  0xa8   : > { %v391_v21 = vmul.f32 %v1358_v20, %v1353_v18  ;;  %v392_v23 = vmul.f32 %v1358_v20, %v1356_v19 }
  0xaa   : > { %v405_v26 = vadd.f32 %v1364_v25, %v391_v21  ;;  %v406_v27 = vadd.f32 %v1364_v25, %v392_v23 }
  0xac   : > { %v409_v29 = vmax.f32 %v405_v26, 0.0  ;;  %v410_v31 = vmax.f32 %v406_v27, 0.0 }
  0xae   : > { %v411_v32 = vpack.c.bf16 %v409_v29, %v407_v28  ;;  %v412_v33 = vpack.c.bf16 %v410_v31, %v408_v30 }
  0xb0   : > { %429 = vmatpush.bf16.msra.mxu2 %v411_v32  ;;  %442 = vmatpush.bf16.msra.mxu1 %v412_v33  ;;  %v1489_v33 = vld [vmem:[%s1752_s1 + $0x4] sm:$0x3] }
  0xb3   : > { %963 = vmatmul.msk.bf16.vlgmr.msra.gmra.mxu2 %vm418_vm0, %v1371_v34  ;;  %964 = vmatmul.msk.bf16.vlgmr.msra.gmra.mxu1 %vm418_vm0, %v1371_v34 }
 0x130   : > { %v444_v36 = vpop.f32.mrf.mxu1 }
 0x131   : > { %v445_v37 = vadd.f32 %v444_v36, %v1377_v35  ;;  %v1494_v36 = vld [vmem:[%s1752_s1 + $0x6] sm:$0x3] }
 0x132   : > { %v502_v47 = vperm.slane %v1494_v36, 0 }
 0x133   : > { %v1380_v38 = vmax.f32 %v445_v37, 0.0 }
 0x135   : > { %538 = vrot.lane.b32.xlu1 %v1380_v38, %s1160_s18  ;;  %524 = vrot.lane.b32.xlu2 %v1380_v38, %s1161_s29 }
 0x136   : > { %552 = vrot.lane.b32.xlu0 %v1380_v38, %s1162_s16  ;;  %v431_v39 = vpop.f32.mrf.mxu2 }
 0x137   : > { %v432_v42 = vadd.f32 %v431_v39, %v1377_v35 }
 0x138   : > { %v446_v40 = vpop.f32.mrf.mxu1 }
 0x139   : > { %v1395_v43 = vmax.f32 %v432_v42, 0.0 }
 0x13d   : > { %496 = vrot.lane.b32.xlu1 %v1380_v38, %s1163_s17  ;;  %482 = vrot.lane.b32.xlu2 %v1380_v38, %s1164_s20 }
 0x13e   : > { %510 = vrot.lane.b32.xlu0 %v1380_v38, %s1165_s25  ;;  %v433_v41 = vpop.f32.mrf.mxu2 }
 0x145   : > { %522 = vrot.lane.b32.xlu1 %v1395_v43, %s1161_s29  ;;  %550 = vrot.lane.b32.xlu2 %v1395_v43, %s1162_s16 }
 0x146   : > { %536 = vrot.lane.b32.xlu0 %v1395_v43, %s1160_s18 }
 0x14d   : > { %480 = vrot.lane.b32.xlu1 %v1395_v43, %s1164_s20  ;;  %508 = vrot.lane.b32.xlu2 %v1395_v43, %s1165_s25 }
 0x14e   : > { %494 = vrot.lane.b32.xlu0 %v1395_v43, %s1163_s17 }
 0x155   : > { %466 = vrot.lane.b32.xlu1 %v1395_v43, %s1764_s19  ;;  %450 = vrot.lane.b32.xlu2 %v1395_v43, %s1766_s26 }
 0x156   : > { %452 = vrot.lane.b32.xlu0 %v1380_v38, %s1766_s26 }
 0x15d   : > { %468 = vrot.lane.b32.xlu2 %v1380_v38, %s1764_s19 }
 0x15e   : > { %576 = vperm.xlu0 %1056, %v372_v44   ;;  %v488_v44 = vperm.slane %v1489_v33, 0 }
 0x18f   : > { %v525_v45 = vpop.permute.xlu2 %524 }
 0x197   : > { %v1420_v46 = vpop.permute.xlu2 %482 }
 0x19f   : > { %v551_v53 = vpop.permute.xlu2 %550 }
 0x1a7   : > { %v539_v52 = vpop.permute.xlu1 %538  ;;  %v509_v2 = vpop.permute.xlu2 %508 }
 0x1a8   : > { %v553_v54 = vpop.permute.xlu0 %552 }
 0x1a9   : > { %v555_v55 = vsel %vm554_vm1, %v551_v53, %v553_v54  ;;  %v556_v56 = vsel %vm554_vm1, %v553_v54, %v551_v53 }
 0x1aa   : > { %v562_v57 = vmul.f32 %v558_v50, %v555_v55  ;;  %v563_v58 = vmul.f32 %v559_v51, %v556_v56 }
 0x1ac   : > { %v572_v59 = vpack.c.bf16 %v562_v57, %v562_v57  ;;  %v573_v60 = vpack.c.bf16 %v563_v58, %v563_v58 }
 0x1ae   : > { %v585_v61 = vsel %vm583_vm2, %v572_v59, 0  ;;  %v588_v62 = vsel %vm583_vm2, %v573_v60, 0 }
 0x1af   : > { %593 = vmatpush.bf16.msrb.mxu2 %v585_v61  ;;  %606 = vmatpush.bf16.msra.mxu3 %v588_v62  ;;  %v497_v63 = vpop.permute.xlu1 %496  ;;  %v451_v42 = vpop.permute.xlu2 %450 }
 0x1b0   : > { %v511_v0 = vpop.permute.xlu0 %510 }
 0x1b1   : > { %v513_v21 = vsel %vm512_vm3, %v509_v2, %v511_v0  ;;  %v514_v22 = vsel %vm512_vm3, %v511_v0, %v509_v2 }
 0x1b2   : > { %v520_v37 = vmul.f32 %v516_v11, %v513_v21  ;;  %v521_v39 = vmul.f32 %v517_v16, %v514_v22 }
 0x1b4   : > { %v568_v57 = vpack.c.bf16 %v520_v37, %v1395_v43  ;;  %v569_v58 = vpack.c.bf16 %v521_v39, %v1380_v38  ;;  %v1529_v38 = vld [vmem:[%s1752_s1 + $0x2] sm:$0x3] }
 0x1b5   : > { %v475_v21 = vperm.slane %v1529_v38, 1 }
 0x1b7   : > { %v523_v17 = vpop.permute.xlu1 %522 }
 0x1b8   : > { %v537_v23 = vpop.permute.xlu0 %536  ;;  %v527_v24 = vsel %vm526_vm4, %v523_v17, %v525_v45  ;;  %v528_v26 = vsel %vm526_vm4, %v525_v45, %v523_v17  ;;  %v489_v45 = vperm.slane %v1489_v33, 1  ;;  %v474_v17 = vperm.slane %v1529_v38, 0 }
 0x1b9   : > { %v541_v27 = vsel %vm540_vm5, %v537_v23, %v539_v52  ;;  %v542_v28 = vsel %vm540_vm5, %v539_v52, %v537_v23  ;;  %v534_v29 = vmul.f32 %v530_v5, %v527_v24  ;;  %v535_v30 = vmul.f32 %v531_v8, %v528_v26  ;;  %v469_v24 = vpop.permute.xlu2 %468 }
 0x1ba   : > { %v548_v31 = vmul.f32 %v544_v9, %v541_v27  ;;  %v549_v32 = vmul.f32 %v545_v10, %v542_v28  ;;  %v503_v52 = vperm.slane %v1494_v36, 1 }
 0x1bc   : > { %v570_v40 = vpack.c.bf16 %v548_v31, %v534_v29  ;;  %v571_v41 = vpack.c.bf16 %v549_v32, %v535_v30 }
 0x1be   : > { %594 = vmatpush.bf16.msrb.mxu2 %v570_v40  ;;  %607 = vmatpush.bf16.msra.mxu3 %v571_v41 }
 0x1bf   : > { %v481_v53 = vpop.permute.xlu1 %480 }
 0x1c0   : > { %v495_v54 = vpop.permute.xlu0 %494  ;;  %v485_v55 = vsel %vm484_vm6, %v481_v53, %v1420_v46  ;;  %v486_v56 = vsel %vm484_vm6, %v1420_v46, %v481_v53  ;;  %v1534_v46 = vld [vmem:[%s1752_s1] sm:$0x3] }
 0x1c1   : > { %v499_v59 = vsel %vm498_vm7, %v495_v54, %v497_v63  ;;  %v500_v60 = vsel %vm498_vm7, %v497_v63, %v495_v54  ;;  %v492_v61 = vmul.f32 %v488_v44, %v486_v56  ;;  %v493_v62 = vmul.f32 %v489_v45, %v485_v55  ;;  %v1568_v54 = vld [vmem:[%s1311_s24 + $0x30] sm:$0xff]  ;;  %v1571_v55 = vld [vmem:[%s1311_s24 + $0x38] sm:$0xff] }
 0x1c2   : > { %v506_v0 = vmul.f32 %v502_v47, %v500_v60  ;;  %v507_v43 = vmul.f32 %v503_v52, %v499_v59  ;;  %595 = vmatpush.bf16.msrb.mxu2 %v568_v57  ;;  %608 = vmatpush.bf16.msra.mxu3 %v569_v58  ;;  %v460_v22 = vperm.slane %v1534_v46, 0  ;;  %v461_v23 = vperm.slane %v1534_v46, 1 }
 0x1c3   : > { %v674_v56 = vmul.f32 %v1568_v54, %v1358_v20  ;;  %v675_v57 = vmul.f32 %v1571_v55, %v1358_v20 }
 0x1c4   : > { %v566_v63 = vpack.c.bf16 %v506_v0, %v492_v61  ;;  %v567_v2 = vpack.c.bf16 %v507_v43, %v493_v62 }
 0x1c5   : > { %v679_v58 = vadd.f32 %v675_v57, %v1364_v25  ;;  %v678_v60 = vadd.f32 %v674_v56, %v1364_v25 }
 0x1c6   : > { %596 = vmatpush.bf16.msrb.mxu2 %v566_v63  ;;  %609 = vmatpush.bf16.msra.mxu3 %v567_v2 }
 0x1c7   : > { %v467_v26 = vpop.permute.xlu1 %466  ;;  %v683_v63 = vmax.f32 %v679_v58, 0.0 }
 0x1c8   : > { %v453_v27 = vpop.permute.xlu0 %452  ;;  %v471_v28 = vsel %vm470_vm8, %v467_v26, %v469_v24  ;;  %v472_v29 = vsel %vm470_vm8, %v469_v24, %v467_v26  ;;  %v682_v26 = vmax.f32 %v678_v60, 0.0 }
 0x1c9   : > { %v457_v30 = vsel %vm456_vm9, %v451_v42, %v453_v27  ;;  %v458_v31 = vsel %vm456_vm9, %v453_v27, %v451_v42  ;;  %v478_v32 = vmul.f32 %v474_v17, %v472_v29  ;;  %v479_v37 = vmul.f32 %v475_v21, %v471_v28  ;;  %v1561_v42 = vld [vmem:[%s1757_s6] sm:$0xf] }
 0x1ca   : > { %v464_v39 = vmul.f32 %v460_v22, %v458_v31  ;;  %v465_v40 = vmul.f32 %v461_v23, %v457_v30  ;;  %v681_v27 = vmax.f32 %v1346_v14, 0.0  ;;  %v680_v29 = vmax.f32 %v1348_v15, 0.0 }
 0x1cc   : > { %v564_v41 = vpack.c.bf16 %v478_v32, %v464_v39  ;;  %v565_v53 = vpack.c.bf16 %v479_v37, %v465_v40  ;;  %v684_v31 = vpack.c.bf16 %v682_v26, %v680_v29  ;;  %v685_v32 = vpack.c.bf16 %v683_v63, %v681_v27  ;;  %v1590_v37 = vld [vmem:[%s1759_s8] sm:$0xff] }
 0x1ce   : > { %597 = vmatpush.bf16.msrb.mxu2 %v564_v41  ;;  %610 = vmatpush.bf16.msra.mxu3 %v565_v53 }
 0x1d0   : > { %v1578_v59 = vpop.permute.xlu0 %576 }
 0x1d1   : > { %965 = vmatmul.msk.bf16.vlgmr.msrb.gmra.mxu2 %vm579_vm10, %v1561_v42  ;;  %966 = vmatmul.msk.bf16.vlgmr.msra.gmra.mxu3 %vm579_vm10, %v1561_v42 }
 0x254   : > { %v599_v61 = vpop.f32.mrf.mxu2  ;;  %v612_v62 = vpop.f32.mrf.mxu3 }
 0x255   : > { %v600_v0 = vadd.f32 %v599_v61, %v1578_v59  ;;  %v613_v43 = vadd.f32 %v612_v62, %v1578_v59 }
 0x257   : > { %v616_v2 = vmax.f32 %v600_v0, 0.0  ;;  %v617_v24 = vmax.f32 %v613_v43, 0.0 }
 0x259   : > { %v618_v28 = vpack.c.bf16 %v616_v2, %v616_v2  ;;  %v619_v20 = vpack.c.bf16 %v617_v24, %v617_v24 }
 0x25b   : > { %v630_v30 = vsel %vm583_vm2, %v618_v28, 0  ;;  %v633_v25 = vsel %vm583_vm2, %v619_v20, 0 }
 0x25c   : > { %v601_v39 = vpop.f32.mrf.mxu2  ;;  %v614_v40 = vpop.f32.mrf.mxu3  ;;  %642 = vmatpush.bf16.msra.mxu0 %v630_v30  ;;  %656 = vmatpush.bf16.msrb.mxu1 %v633_v25 }
 0x25f   : > { %971 = vmatmul.msk.bf16.vlgmr.msra.gmra.mxu0 %vm625_vm11, %v1590_v37  ;;  %972 = vmatmul.msk.bf16.vlgmr.msrb.gmra.mxu1 %vm625_vm11, %v1590_v37 }
 0x260   : > { %693 = vmatpush.bf16.msrb.mxu0 %v684_v31  ;;  %706 = vmatpush.bf16.msra.mxu1 %v685_v32 }
 0x26f   : > { %977 = vmatmul.msk.bf16.vlgmr.msrb.gmra.mxu0 %vm418_vm0, %v1371_v34  ;;  %978 = vmatmul.msk.bf16.vlgmr.msra.gmra.mxu1 %vm418_vm0, %v1371_v34 }
 0x2dc   : > { %v644_v14 = vpop.f32.mrf.mxu0  ;;  %v658_v15 = vpop.f32.mrf.mxu1 }
 0x2dd   : > { %v645_v41 = vadd.f32 %v644_v14, %v1341_v12  ;;  %v659_v53 = vadd.f32 %v658_v15, %v1344_v13 }
 0x2df   : > { %663 = vst [vmem:[%s1604_s15] sm:$0xff] %v645_v41 }
 0x2e0   : > { %664 = vst [vmem:[%s1604_s15 + $0x8] sm:$0xff] %v659_v53 }
 0x2e4   : > { %v646_v56 = vpop.f32.mrf.mxu0  ;;  %v660_v57 = vpop.f32.mrf.mxu1 }
 0x2e5   : > { %v647_v58 = vadd.f32 %v646_v56, %v1353_v18  ;;  %v661_v34 = vadd.f32 %v660_v57, %v1356_v19 }
 0x2e7   : > { %665 = vst [vmem:[%s1604_s15 + $0x10] sm:$0xff] %v647_v58 }
 0x2e8   : > { %666 = vst [vmem:[%s1604_s15 + $0x18] sm:$0xff] %v661_v34 }
 0x2ec   : > { %v695_v12 = vpop.f32.mrf.mxu0  ;;  %v708_v60 = vpop.f32.mrf.mxu1 }
 0x2ed   : > { %v696_v13 = vadd.f32 %v695_v12, %v1377_v35  ;;  %v709_v61 = vadd.f32 %v708_v60, %v1377_v35 }
 0x2ef   : > { %v712_v62 = vmax.f32 %v696_v13, 0.0  ;;  %v713_v0 = vmax.f32 %v709_v61, 0.0 }
 0x2f1   : > { %772 = vrot.lane.b32.xlu2 %v713_v0, %s1162_s16  ;;  %754 = vrot.lane.b32.xlu0 %v712_v62, %s1161_s29 }
 0x2f2   : > { %770 = vrot.lane.b32.xlu1 %v712_v62, %s1162_s16  ;;  %s1777_s16 = smov 16  }
 0x2f4   : > { %v697_v43 = vpop.f32.mrf.mxu0  ;;  %v710_v18 = vpop.f32.mrf.mxu1 }
 0x2f9   : > { %762 = vrot.lane.b32.xlu2 %v712_v62, %s1160_s18  ;;  %764 = vrot.lane.b32.xlu0 %v713_v0, %s1160_s18  ;;  %s997_s18 = sshll.u32 %s1240_s13, 6  ;;  %s864_s13 = scalar_lea.sflag [#allocation4], %s1305_s14 }
 0x2fa   : > { %756 = vrot.lane.b32.xlu1 %v713_v0, %s1161_s29 }
 0x301   : > { %748 = vrot.lane.b32.xlu2 %v713_v0, %s1165_s25  ;;  %730 = vrot.lane.b32.xlu0 %v712_v62, %s1164_s20 }
 0x302   : > { %746 = vrot.lane.b32.xlu1 %v712_v62, %s1165_s25  ;;  %s877_s25 = sshll.u32 %s1604_s15, 4  ;;  %s878_s25 = int_to_ptr.vmem [resolvable:$true] %s877_s25 }
 0x309   : > { %738 = vrot.lane.b32.xlu2 %v712_v62, %s1163_s17  ;;  %740 = vrot.lane.b32.xlu0 %v713_v0, %s1163_s17 }
 0x30a   : > { %732 = vrot.lane.b32.xlu1 %v713_v0, %s1164_s20  ;;  %s876_s20 = scalar_lea.hbm %s1760_s9, %s997_s18 }
 0x30b   : > { %s879_s19 = sshll.u32 %s876_s20, 4  ;;  %s880_s19 = int_to_ptr.hbm [resolvable:$true] %s879_s19 }
 0x30c   : > { %s1103_s26 = sshra.s32 %s880_s19, 4  ;;  %s1104_s26 = int_to_ptr.hbm [resolvable:$true] %s1103_s26 }
 0x30d   : > { %s1105_s27 = scalar_lea.hbm %s1104_s26, 64  ;;  %p1110_p0 = scmp.lt.s32.totalorder %s1104_s26, %s1760_s9 }
 0x30e   : > { %p1106_p6 = scmp.ne.s32.totalorder %s1104_s26, %s1105_s27  ;;  %p1111_p1 = scmp.lt.s32.totalorder %s1109_s28, %s1105_s27 }
 0x310   : > { %p1107_p9 = pnand %p1106_p6, %p1269_p11  ;;  %p1112_p3 = por %p1111_p1, %p1110_p0 }
 0x311   : > { %716 = vrot.lane.b32.xlu2 %v713_v0, %s1776_s11  ;;  %722 = vrot.lane.b32.xlu0 %v712_v62, %s1777_s16 }
 0x312   : > { %714 = vrot.lane.b32.xlu1 %v712_v62, %s1776_s11  ;;  %p1108_p13 = pneg %p1107_p9 }
 0x314   : > { %p1113_p4 = pnand %p1112_p3, %p1108_p13 }
 0x31a   : > { %724 = vrot.lane.b32.xlu1 %v713_v0, %s1777_s16 }
 0x34b   : > { %v773_v19 = vpop.permute.xlu2 %772 }
 0x353   : > { %v763_v28 = vpop.permute.xlu2 %762 }
 0x35b   : > { %v749_v57 = vpop.permute.xlu2 %748 }
 0x363   : > { %v755_v35 = vpop.permute.xlu0 %754  ;;  %v739_v12 = vpop.permute.xlu2 %738 }
 0x364   : > { %v771_v63 = vpop.permute.xlu1 %770 }
 0x365   : > { %v774_v2 = vsel %vm554_vm1, %v771_v63, %v773_v19  ;;  %v775_v24 = vsel %vm554_vm1, %v773_v19, %v771_v63 }
 0x366   : > { %v776_v26 = vmul.f32 %v774_v2, %v558_v50  ;;  %v777_v27 = vmul.f32 %v775_v24, %v559_v51 }
 0x368   : > { %v786_v20 = vpack.c.bf16 %v776_v26, %v776_v26  ;;  %v787_v29 = vpack.c.bf16 %v777_v27, %v777_v27 }
 0x36a   : > { %v789_v30 = vsel %vm583_vm2, %v786_v20, 0  ;;  %v792_v25 = vsel %vm583_vm2, %v787_v29, 0 }
 0x36b   : > { %797 = vmatpush.bf16.msra.mxu2 %v789_v30  ;;  %810 = vmatpush.bf16.msrb.mxu3 %v792_v25  ;;  %v765_v31 = vpop.permute.xlu0 %764  ;;  %v717_v63 = vpop.permute.xlu2 %716 }
 0x36c   : > { %v766_v32 = vsel %vm540_vm5, %v763_v28, %v765_v31  ;;  %v767_v39 = vsel %vm540_vm5, %v765_v31, %v763_v28  ;;  %v757_v50 = vpop.permute.xlu1 %756 }
 0x36d   : > { %v768_v49 = vmul.f32 %v766_v32, %v544_v9  ;;  %v769_v51 = vmul.f32 %v767_v39, %v545_v10  ;;  %v758_v40 = vsel %vm526_vm4, %v755_v35, %v757_v50  ;;  %v759_v14 = vsel %vm526_vm4, %v757_v50, %v755_v35 }
 0x36e   : > { %v760_v15 = vmul.f32 %v758_v40, %v530_v5  ;;  %v761_v41 = vmul.f32 %v759_v14, %v531_v8 }
 0x370   : > { %v784_v53 = vpack.c.bf16 %v768_v49, %v760_v15  ;;  %v785_v56 = vpack.c.bf16 %v769_v51, %v761_v41 }
 0x372   : > { %798 = vmatpush.bf16.msra.mxu2 %v784_v53  ;;  %811 = vmatpush.bf16.msrb.mxu3 %v785_v56 }
 0x373   : > { %v731_v9 = vpop.permute.xlu0 %730 }
 0x374   : > { %v747_v3 = vpop.permute.xlu1 %746 }
 0x375   : > { %v750_v10 = vsel %vm512_vm3, %v747_v3, %v749_v57  ;;  %v751_v58 = vsel %vm512_vm3, %v749_v57, %v747_v3 }
 0x376   : > { %v752_v34 = vmul.f32 %v750_v10, %v516_v11  ;;  %v753_v1 = vmul.f32 %v751_v58, %v517_v16 }
 0x378   : > { %v782_v5 = vpack.c.bf16 %v752_v34, %v712_v62  ;;  %v783_v8 = vpack.c.bf16 %v753_v1, %v713_v0 }
 0x37a   : > { %799 = vmatpush.bf16.msra.mxu2 %v782_v5  ;;  %812 = vmatpush.bf16.msrb.mxu3 %v783_v8 }
 0x37b   : > { %v741_v60 = vpop.permute.xlu0 %740 }
 0x37c   : > { %v742_v13 = vsel %vm498_vm7, %v739_v12, %v741_v60  ;;  %v743_v61 = vsel %vm498_vm7, %v741_v60, %v739_v12  ;;  %v733_v43 = vpop.permute.xlu1 %732 }
 0x37d   : > { %v744_v18 = vmul.f32 %v743_v61, %v502_v47  ;;  %v745_v4 = vmul.f32 %v742_v13, %v503_v52  ;;  %v734_v11 = vsel %vm484_vm6, %v731_v9, %v733_v43  ;;  %v735_v16 = vsel %vm484_vm6, %v733_v43, %v731_v9 }
 0x37e   : > { %v736_v62 = vmul.f32 %v735_v16, %v488_v44  ;;  %v737_v0 = vmul.f32 %v734_v11, %v489_v45 }
 0x380   : > { %v780_v19 = vpack.c.bf16 %v744_v18, %v736_v62  ;;  %v781_v35 = vpack.c.bf16 %v745_v4, %v737_v0 }
 0x382   : > { %800 = vmatpush.bf16.msra.mxu2 %v780_v19  ;;  %813 = vmatpush.bf16.msrb.mxu3 %v781_v35 }
 0x383   : > { %v723_v2 = vpop.permute.xlu0 %722 }
 0x384   : > { %v715_v47 = vpop.permute.xlu1 %714 }
 0x385   : > { %v718_v36 = vsel %vm456_vm9, %v715_v47, %v717_v63  ;;  %v719_v52 = vsel %vm456_vm9, %v717_v63, %v715_v47 }
 0x386   : > { %v720_v45 = vmul.f32 %v719_v52, %v460_v22  ;;  %v721_v26 = vmul.f32 %v718_v36, %v461_v23 }
 0x38c   : > { %v725_v24 = vpop.permute.xlu1 %724 }
 0x38d   : > { %v726_v44 = vsel %vm470_vm8, %v723_v2, %v725_v24  ;;  %v727_v33 = vsel %vm470_vm8, %v725_v24, %v723_v2 }
 0x38e   : > { %v728_v27 = vmul.f32 %v727_v33, %v474_v17  ;;  %v729_v28 = vmul.f32 %v726_v44, %v475_v21 }
 0x390   : > { %v778_v20 = vpack.c.bf16 %v728_v27, %v720_v45  ;;  %v779_v29 = vpack.c.bf16 %v729_v28, %v721_v26 }
 0x392   : > { %801 = vmatpush.bf16.msra.mxu2 %v778_v20  ;;  %814 = vmatpush.bf16.msrb.mxu3 %v779_v29 }
 0x395   : > { %979 = vmatmul.msk.bf16.vlgmr.msra.gmra.mxu2 %vm579_vm10, %v1561_v42  ;;  %980 = vmatmul.msk.bf16.vlgmr.msrb.gmra.mxu3 %vm579_vm10, %v1561_v42 }
 0x418   : > { %v803_v48 = vpop.f32.mrf.mxu2  ;;  %v816_v22 = vpop.f32.mrf.mxu3 }
 0x419   : > { %v804_v46 = vadd.f32 %v803_v48, %v1578_v59  ;;  %v817_v23 = vadd.f32 %v816_v22, %v1578_v59 }
 0x41b   : > { %v820_v17 = vmax.f32 %v804_v46, 0.0  ;;  %v821_v38 = vmax.f32 %v817_v23, 0.0 }
 0x41d   : > { %v822_v21 = vpack.c.bf16 %v820_v17, %v820_v17  ;;  %v823_v30 = vpack.c.bf16 %v821_v38, %v821_v38 }
 0x41f   : > { %v825_v25 = vsel %vm583_vm2, %v822_v21, 0  ;;  %v828_v31 = vsel %vm583_vm2, %v823_v30, 0 }
 0x420   : > { %v805_v32 = vpop.f32.mrf.mxu2  ;;  %v818_v42 = vpop.f32.mrf.mxu3  ;;  %837 = vmatpush.bf16.msra.mxu0 %v825_v25  ;;  %851 = vmatpush.bf16.msrb.mxu1 %v828_v31 }
 0x423   : > { %981 = vmatmul.msk.bf16.vlgmr.msra.gmra.mxu0 %vm625_vm11, %v1590_v37  ;;  %982 = vmatmul.msk.bf16.vlgmr.msrb.gmra.mxu1 %vm625_vm11, %v1590_v37 }
 0x4a0   : > { %v839_v59 = vpop.f32.mrf.mxu0  ;;  %v853_v39 = vpop.f32.mrf.mxu1 }
 0x4a1   : > { %v840_v50 = vadd.f32 %v1333_v6, %v839_v59  ;;  %v854_v49 = vadd.f32 %v1336_v7, %v853_v39 }
 0x4a3   : > { %983 = vst [vmem:[%s1604_s15 + $0x20] sm:$0xff] %v840_v50 }
 0x4a4   : > { %984 = vst [vmem:[%s1604_s15 + $0x28] sm:$0xff] %v854_v49 }
 0x4a8   : > { %v841_v37 = vpop.f32.mrf.mxu0  ;;  %v855_v51 = vpop.f32.mrf.mxu1 }
 0x4a9   : > { %v842_v40 = vadd.f32 %v1568_v54, %v841_v37  ;;  %v856_v6 = vadd.f32 %v1571_v55, %v855_v51 }
 0x4ab   : > { %985 = vst [vmem:[%s1604_s15 + $0x30] sm:$0xff] %v842_v40 }
 0x4ac   : > { %986 = vst [vmem:[%s1604_s15 + $0x38] sm:$0xff] %v856_v6 }
 0x4ad   : > { %1116 = shalt.err (!%p1113_p4)
}
 0x4ae   : > { %s1168_s14 = smov 256  }
 0x4af   : > { %1000 = dma.vmem_to_hbm [thread:$0]  (%p1269_p11), %s878_s25, 1024, %s880_s19, %s864_s13, %s1168_s14, %s1168_s14, %s1777_s16  }
 0x4b0 PF: > { %s894_s15 = sand.u32 1, %s1143_s30   ;;  %p1778_p7 = scmp.ge.s32.totalorder %s1155_s12, 2 }
 0x4b1   : > { %s895_s29 = scalar_lea.sflag [#allocation4], %s894_s15 }
 0x4b2   : > { %p1007_p5 = pnand %p1778_p7, %p1273_p12 }
 0x4b4   : > { %p1008_p8 = pneg %p1007_p5 }
 0x4b6   : > { %1138 = dma.done.wait (%p1008_p8), %s895_s29, 1024  }
 0x4b7   : > { %1140 = vsyncadd (%p1008_p8), %s895_s29, 4294966272  ;;  %s1779_s12 = sld [smem:[#allocation9_spill]]  ;;  %s1782_s30 = smov %s1147_s10 }
 0x4b8   : > { %s1780_s17 = sld [smem:[#allocation8_spill]] }
 0x4b9   : > { %s1781_s11 = sld [smem:[#allocation10_spill]] }
 0x4bd   : > { %p22_p10 = scmp.ge.s32.totalorder %s1779_s12, 4  }
 0x4be   : > { %s1783_s10 = smov %s1780_s17 }
 0x4bf   :  { %24 = sbr.rel (!%p22_p10) target bundleno = 5 (0x5), region = 103 }
 0x4c4   :  { %901 = vsyncpa [#allocation3], 1 }
 0x4c5   :  { %903 = vsyncpa [#allocation3 + $0x1], 1 }
 0x4c6   :  { %904 = vsyncpa [#allocation4], 1 }
 0x4c7   :  { %906 = vsyncpa [#allocation4 + $0x1], 1 }

</bundles_post_ra>
